<compile_context>
chip_gen: v6e
topology: v6e:2x2x1
jax: 0.10.0
libtpu: 0.0.40
codegen_flags: <defaults>
</compile_context>

<pallas_src>
import jax
import jax.numpy as jnp
from jax.experimental import pallas as pl
from jax.experimental.pallas import tpu as pltpu


def _planet_head_kernel(mol_ref, tgt_ref, wm_ref, wt_ref, b_ref, out_ref):
    """Fused PLANet head on one batch tile.

    out = mol @ Wm + tgt @ Wt + b, where [Wm; Wt] = W1^T @ W2^T (split along
    the concat axis) and b = b1 @ W2^T + b2.  Two small MXU matmuls per tile,
    accumulated in f32, plus an f32 bias add.
    """
    acc = jnp.dot(mol_ref[...], wm_ref[...], preferred_element_type=jnp.float32)
    acc = acc + jnp.dot(tgt_ref[...], wt_ref[...], preferred_element_type=jnp.float32)
    out_ref[...] = (acc + b_ref[...]).astype(out_ref.dtype)


def fuse_planet_head_params(w1_t, b1, w2_t, b2, hm):
    """Trace-time algebra: collapse the two bias-Linears into one affine map.

    Valid for PLANet's default branch (multi_concat=False, MLP=False): there is
    no nonlinearity / norm / dropout between concatenation_gcn and
    classification, so
        (cat([m, t], 1) @ W1^T + b1) @ W2^T + b2
     == m @ (W1^T[:Hm] @ W2^T) + t @ (W1^T[Hm:] @ W2^T) + (b1 @ W2^T + b2).

    Call this once (e.g. at parameter-load time); the per-forward kernel then
    only touches the activations.

    w1_t: (Hm+Hp, H)  concatenation_gcn weight, pre-transposed to (in, out)
    b1:   (H,)
    w2_t: (H, C)      classification weight, pre-transposed to (in, out)
    b2:   (C,)
    Returns (w_mol (Hm, C), w_tgt (Hp, C), b_fused (1, C)) in f32.
    """
    w1_t = w1_t.astype(jnp.float32)
    w2_t = w2_t.astype(jnp.float32)
    w_fused = w1_t @ w2_t                                         # (Hm+Hp, C)
    b_fused = (b1.astype(jnp.float32) @ w2_t
               + b2.astype(jnp.float32)).reshape(1, -1)           # (1, C)
    return w_fused[:hm], w_fused[hm:], b_fused


def planet_forward(mol_feat, tgt_feat, w_mol, w_tgt, b_fused, *, block_b=4096):
    """PLANet head forward (default branch) on pre-fused parameters.

    mol_feat: (B, Hm)  pooled molecule-encoder output (f32 or bf16)
    tgt_feat: (B, Hp)  pooled target-encoder output (same dtype)
    w_mol:    (Hm, C)  fused weight, molecule half
    w_tgt:    (Hp, C)  fused weight, target half
    b_fused:  (1, C)   fused bias
    Returns (B, C) f32 logits.
    """
    b_total, hm = mol_feat.shape
    hp = tgt_feat.shape[1]
    c = w_mol.shape[1]

    # Activations are consumed as-is (no concat / pad / cast passes over HBM).
    # Weights are tiny -> casting them to the activation dtype is free.
    act_dtype = mol_feat.dtype
    w_mol = w_mol.astype(act_dtype)
    w_tgt = w_tgt.astype(act_dtype)
    b_fused = b_fused.astype(jnp.float32).reshape(1, c)

    # Batch tiling: large sublane-aligned tiles to amortize per-step overhead,
    # capped so the grid keeps >= ~4 tiles (v7x megacore split via "parallel").
    tb = min(block_b, ((pl.cdiv(b_total, 4) + 7) // 8) * 8)
    if tb >= b_total:
        tb = b_total                         # single block: block dim == array dim
        n_blocks = 1
    else:
        tb = max(8, (tb // 8) * 8)           # partial tiles must be 8-row aligned
        n_blocks = pl.cdiv(b_total, tb)      # ragged last tile -> Pallas masks writes

    itemsize = jnp.dtype(act_dtype).itemsize
    cost = pl.CostEstimate(
        flops=2 * b_total * (hm + hp) * c,
        transcendentals=0,
        bytes_accessed=(b_total * (hm + hp) * itemsize      # activations in
                        + b_total * c * 4                   # logits out
                        + (hm + hp) * c * itemsize + c * 4),  # weights + bias
    )

    return pl.pallas_call(
        _planet_head_kernel,
        out_shape=jax.ShapeDtypeStruct((b_total, c), jnp.float32),
        grid=(n_blocks,),
        in_specs=[
            pl.BlockSpec((tb, hm), lambda i: (i, 0)),   # streamed molecule features
            pl.BlockSpec((tb, hp), lambda i: (i, 0)),   # streamed target features
            pl.BlockSpec((hm, c), lambda i: (0, 0)),    # resident fused weight (mol half)
            pl.BlockSpec((hp, c), lambda i: (0, 0)),    # resident fused weight (tgt half)
            pl.BlockSpec((1, c), lambda i: (0, 0)),     # resident fused bias
        ],
        # C << 128 -> masked partial stores; only v5e's single store slot could
        # ever care, and not at these sizes.
        out_specs=pl.BlockSpec((tb, c), lambda i: (i, 0)),
        compiler_params=pltpu.CompilerParams(
            dimension_semantics=("parallel",)),          # megacore split on v7x
        cost_estimate=cost,
    )(mol_feat, tgt_feat, w_mol, w_tgt, b_fused)


if __name__ == "__main__":
    # Small "args" consistent with the module's __init__.
    hidden_channels = 64          # args.hidden_channels      (molecule width)
    hidden_channels_prot = 64     # args.hidden_channels_prot (target width)
    final_output = hidden_channels + hidden_channels_prot     # 128
    nclasses = 4                  # args.nclasses

    key = jax.random.PRNGKey(0)
    k_w1, k_b1, k_w2, k_b2 = jax.random.split(key, 4)

    def reference(mol, tgt, w1, b1, w2, b2):
        # Pure-JAX, unfused forward of the default PLANet branch.
        all_feat = jnp.concatenate([mol, tgt], axis=1)
        hidden = all_feat @ w1.T + b1
        return hidden @ w2.T + b2

    def run_case(batch, w1, b1, w2, b2, label):
        km, kt = jax.random.split(jax.random.fold_in(key, batch), 2)
        mol = jax.random.normal(km, (batch, hidden_channels), dtype=jnp.float32)
        tgt = jax.random.normal(kt, (batch, hidden_channels_prot), dtype=jnp.float32)
        w_mol, w_tgt, b_f = fuse_planet_head_params(w1.T, b1, w2.T, b2, hidden_channels)
        out = jax.block_until_ready(planet_forward(mol, tgt, w_mol, w_tgt, b_f))
        ref = reference(mol, tgt, w1, b1, w2, b2)
        assert out.shape == (batch, nclasses), label
        assert jnp.allclose(out, ref, atol=1e-4, rtol=1e-4), f"{label}: mismatch vs reference"

    # concatenation_gcn init exactly as in __init__: identity on the first
    # `output_molecule` diagonal, zeros elsewhere; bias zeros.
    w1_planet = jnp.zeros((hidden_channels, final_output), dtype=jnp.float32)
    diag = jnp.arange(hidden_channels)
    w1_planet = w1_planet.at[diag, diag].set(1.0)
    b1_planet = jnp.zeros((hidden_channels,), dtype=jnp.float32)

    # classification = nn.Linear(hidden_channels, nclasses), PyTorch-style init.
    bound = 1.0 / jnp.sqrt(jnp.float32(hidden_channels))
    w2 = jax.random.uniform(k_w2, (nclasses, hidden_channels),
                            minval=-bound, maxval=bound, dtype=jnp.float32)
    b2 = jax.random.uniform(k_b2, (nclasses,),
                            minval=-bound, maxval=bound, dtype=jnp.float32)

    # Case 1: PLANet's actual init, batch = 24 -> three exact 8-row tiles.
    run_case(24, w1_planet, b1_planet, w2, b2, "planet-init")

    # Case 2: random W1/b1 (exercises the target half of the fused weight) with
    # a ragged batch: B = 20 -> 8-row tiles, last tile partial (masked stores).
    w1_rand = 0.1 * jax.random.normal(k_w1, (hidden_channels, final_output), dtype=jnp.float32)
    b1_rand = 0.1 * jax.random.normal(k_b1, (hidden_channels,), dtype=jnp.float32)
    run_case(20, w1_rand, b1_rand, w2, b2, "random-W1-ragged-batch")

    # Case 3: tiny batch -> single full block (tb == B, unaligned sublane dim OK).
    run_case(6, w1_rand, b1_rand, w2, b2, "single-tile")

    print("KERNEL_OK")
</pallas_src>

<mosaic_0001>
module attributes {stable_mosaic.version = 11 : i64} {
  func.func @_planet_head_kernel(%arg0: i32, %arg1: memref<8x64xf32, #tpu.memory_space<vmem>>, %arg2: memref<8x64xf32, #tpu.memory_space<vmem>>, %arg3: memref<64x4xf32, #tpu.memory_space<vmem>>, %arg4: memref<64x4xf32, #tpu.memory_space<vmem>>, %arg5: memref<1x4xf32, #tpu.memory_space<vmem>>, %arg6: memref<8x4xf32, #tpu.memory_space<vmem>>) attributes {dimension_semantics = [#tpu.dimension_semantics<parallel>], iteration_bounds = array<i64: 3>, scalar_prefetch = 0 : i64, scratch_operands = 0 : i64, tpu.core_type = #tpu.core_type<tc>, window_params = [{transform_indices = @transform_0, window_bounds = array<i64: 8, 64>}, {transform_indices = @transform_1, window_bounds = array<i64: 8, 64>}, {pipeline_mode = #tpu.pipeline_mode<synchronous>, transform_indices = @transform_2, window_bounds = array<i64: 64, 4>}, {pipeline_mode = #tpu.pipeline_mode<synchronous>, transform_indices = @transform_3, window_bounds = array<i64: 64, 4>}, {pipeline_mode = #tpu.pipeline_mode<synchronous>, transform_indices = @transform_4, window_bounds = array<i64: 1, 4>}, {transform_indices = @transform_5, window_bounds = array<i64: 8, 4>}]} {
    %c0 = arith.constant 0 : index
    %c0_0 = arith.constant 0 : index
    %0 = vector.load %arg1[%c0, %c0_0] : memref<8x64xf32, #tpu.memory_space<vmem>>, vector<8x64xf32>
    %c0_1 = arith.constant 0 : index
    %c0_2 = arith.constant 0 : index
    %1 = vector.load %arg3[%c0_1, %c0_2] : memref<64x4xf32, #tpu.memory_space<vmem>>, vector<64x4xf32>
    %cst = arith.constant dense<0.000000e+00> : vector<8x4xf32>
    %2 = tpu.matmul %0, %1, %cst {dimension_numbers = #tpu.dot_dimension_numbers<[1], [0], [0], [1], [0, 0, 1, 1], [], []>} : vector<8x64xf32>, vector<64x4xf32>, vector<8x4xf32> -> vector<8x4xf32>
    %c0_3 = arith.constant 0 : index
    %c0_4 = arith.constant 0 : index
    %3 = vector.load %arg2[%c0_3, %c0_4] : memref<8x64xf32, #tpu.memory_space<vmem>>, vector<8x64xf32>
    %c0_5 = arith.constant 0 : index
    %c0_6 = arith.constant 0 : index
    %4 = vector.load %arg4[%c0_5, %c0_6] : memref<64x4xf32, #tpu.memory_space<vmem>>, vector<64x4xf32>
    %cst_7 = arith.constant dense<0.000000e+00> : vector<8x4xf32>
    %5 = tpu.matmul %3, %4, %cst_7 {dimension_numbers = #tpu.dot_dimension_numbers<[1], [0], [0], [1], [0, 0, 1, 1], [], []>} : vector<8x64xf32>, vector<64x4xf32>, vector<8x4xf32> -> vector<8x4xf32>
    %6 = arith.addf %2, %5 : vector<8x4xf32>
    %c0_8 = arith.constant 0 : index
    %c0_9 = arith.constant 0 : index
    %7 = vector.load %arg5[%c0_8, %c0_9] : memref<1x4xf32, #tpu.memory_space<vmem>>, vector<1x4xf32>
    %8 = vector.broadcast %7 : vector<1x4xf32> to vector<8x4xf32>
    %9 = arith.addf %6, %8 : vector<8x4xf32>
    %c0_10 = arith.constant 0 : index
    %c0_11 = arith.constant 0 : index
    %10 = vector.load %arg6[%c0_10, %c0_11] : memref<8x4xf32, #tpu.memory_space<vmem>>, vector<8x4xf32>
    tpu.vector_store %arg6[%c0_10, %c0_11], %9 {strides = array<i32>} : memref<8x4xf32, #tpu.memory_space<vmem>>, vector<8x4xf32>,
    return
  }
  func.func @transform_0(%arg0: i32) -> (i32, i32) {
    %c0_i32 = arith.constant 0 : i32
    %c0_i32_0 = arith.constant 0 : i32
    return %arg0, %c0_i32 : i32, i32
  }
  func.func @transform_1(%arg0: i32) -> (i32, i32) {
    %c0_i32 = arith.constant 0 : i32
    %c0_i32_0 = arith.constant 0 : i32
    return %arg0, %c0_i32 : i32, i32
  }
  func.func @transform_2(%arg0: i32) -> (i32, i32) {
    %c0_i32 = arith.constant 0 : i32
    %c0_i32_0 = arith.constant 0 : i32
    %c0_i32_1 = arith.constant 0 : i32
    return %c0_i32, %c0_i32_0 : i32, i32
  }
  func.func @transform_3(%arg0: i32) -> (i32, i32) {
    %c0_i32 = arith.constant 0 : i32
    %c0_i32_0 = arith.constant 0 : i32
    %c0_i32_1 = arith.constant 0 : i32
    return %c0_i32, %c0_i32_0 : i32, i32
  }
  func.func @transform_4(%arg0: i32) -> (i32, i32) {
    %c0_i32 = arith.constant 0 : i32
    %c0_i32_0 = arith.constant 0 : i32
    %c0_i32_1 = arith.constant 0 : i32
    return %c0_i32, %c0_i32_0 : i32, i32
  }
  func.func @transform_5(%arg0: i32) -> (i32, i32) {
    %c0_i32 = arith.constant 0 : i32
    %c0_i32_0 = arith.constant 0 : i32
    return %arg0, %c0_i32 : i32, i32
  }
}

</mosaic_0001>

<bundles_post_ra>
// kernel: tpu_custom_call.1
= control target key start
LH: loop header
LB: loop body
LE: loop exit
PB: predicated region body
PF: predicated region fallthrough
CT: control target
= control target key end

     0   :  { %s596_s18 = smov 0   ;;  %s672_s0 = inlined_call_operand.vmem [shape: f32[24,64], index: 0, kind: input, shape index: {}]   ;;  %s673_s1 = inlined_call_operand.vmem [shape: f32[24,64], index: 1, kind: input, shape index: {}]   ;;  %s674_s2 = inlined_call_operand.vmem [shape: f32[64,4], index: 2, kind: input, shape index: {}]   ;;  %s675_s3 = inlined_call_operand.vmem [shape: f32[64,4], index: 3, kind: input, shape index: {}]   ;;  %s676_s4 = inlined_call_operand.vmem [shape: f32[1,4], index: 4, kind: input, shape index: {}]   ;;  %s677_s5 = inlined_call_operand.vmem [shape: f32[24,4], index: 5, kind: output, shape index: {}]  }
   0x1 LB: > { %s477_s19 = sadd.s32 4294967295, %s562_s18   ;;  %p481_p0 = scmp.ge.s32.totalorder %s562_s18, 1  ;;  %s562_s18 = sphi %s596_s18, %s15_s18  }
   0x2   : > { %p195_p1 = scmp.lt.s32.totalorder %s562_s18, 4 }
   0x4   : > { %p196_p2 = pnand %p481_p0, %p195_p1 }
   0x5   : > { %p225_p3 = scmp.lt.s32.totalorder (!%p196_p2), %s477_s19, 2 }
   0x6   : > { %199 = sbr.rel (%p196_p2) target bundleno = 227 (0xe3), region = 40 }
   0xb   : > { %v254_v0 = vld [vmem:[%s675_s3 + $0x38] sm:$0xff]  ;;  %v564_v2 = vmov 0.0   ;;  %v253_v3 = vld [vmem:[%s675_s3 + $0x30] sm:$0xff]  ;;  %v252_v5 = vld [vmem:[%s675_s3 + $0x28] sm:$0xff]  ;;  %s679_s19 = smov (!%p225_p3, %s477_s19), 2  ;;  %vm255_vm0 = vcmask 523264  }
   0xc   : > { %v245_v1 = vld [vmem:[%s674_s2 + $0x38] sm:$0xff]  ;;  %508 = vmatprep.subr.mxu0 %v564_v2  ;;  %527 = vmatprep.subr.mxu1 %v564_v2  ;;  %v244_v4 = vld [vmem:[%s674_s2 + $0x30] sm:$0xff]  ;;  %v243_v6 = vld [vmem:[%s674_s2 + $0x28] sm:$0xff]  ;;  %s640_s21 = sshll.u32 %s679_s19, 3  ;;  %vm565_vm1 = vmmov 0   ;;  %vm410_vm2 = vcmask 31744  }
   0xd   : > { %509 = vmatpush3.msra.mxu0 %v254_v0  ;;  %528 = vmatpush3.msra.mxu1 %v245_v1  ;;  %v251_v7 = vld [vmem:[%s675_s3 + $0x20] sm:$0xff]  ;;  %v250_v9 = vld [vmem:[%s675_s3 + $0x18] sm:$0xff]  ;;  %v249_v11 = vld [vmem:[%s675_s3 + $0x10] sm:$0xff]  ;;  %s232_s19 = scalar_lea.vmem %s673_s1, %s640_s21  ;;  %s228_s30 = scalar_lea.vmem %s672_s0, %s640_s21 }
   0xe   : > { %510 = vmatprep.subr.mxu0 %v564_v2  ;;  %529 = vmatprep.subr.mxu1 %v564_v2  ;;  %v242_v8 = vld [vmem:[%s674_s2 + $0x20] sm:$0xff]  ;;  %v241_v10 = vld [vmem:[%s674_s2 + $0x18] sm:$0xff]  ;;  %v240_v12 = vld [vmem:[%s674_s2 + $0x10] sm:$0xff]  ;;  %s236_s14 = scalar_lea.vmem %s677_s5, %s640_s21 }
   0xf   : > { %511 = vmatpush3.msra.mxu0 %v253_v3  ;;  %530 = vmatpush3.msra.mxu1 %v244_v4  ;;  %v248_v13 = vld [vmem:[%s675_s3 + $0x8] sm:$0xff]  ;;  %v247_v15 = vld [vmem:[%s675_s3] sm:$0xff] }
  0x10   : > { %512 = vmatprep.subr.mxu0 %v564_v2  ;;  %531 = vmatprep.subr.mxu1 %v564_v2  ;;  %v239_v14 = vld [vmem:[%s674_s2 + $0x8] sm:$0xff]  ;;  %v238_v16 = vld [vmem:[%s674_s2] sm:$0xff] }
  0x11   : > { %513 = vmatpush3.msra.mxu0 %v252_v5  ;;  %532 = vmatpush3.msra.mxu1 %v243_v6  ;;  %v246_v17 = vld [vmem:[%s232_s19] sm:$0xff] }
  0x12   : > { %514 = vmatprep.subr.mxu0 %v564_v2  ;;  %533 = vmatprep.subr.mxu1 %v564_v2  ;;  %v237_v18 = vld [vmem:[%s228_s30] sm:$0xff] }
  0x13   : > { %515 = vmatpush3.msra.mxu0 %v251_v7  ;;  %534 = vmatpush3.msra.mxu1 %v242_v8  ;;  %v487_v21 = vld [vmem:[%s676_s4] ss:$0 sm:$0xff] }
  0x14   : > { %516 = vmatprep.subr.mxu0 %v564_v2  ;;  %535 = vmatprep.subr.mxu1 %v564_v2 }
  0x15   : > { %517 = vmatpush3.msra.mxu0 %v250_v9  ;;  %536 = vmatpush3.msra.mxu1 %v241_v10 }
  0x16   : > { %518 = vmatprep.subr.mxu0 %v564_v2  ;;  %537 = vmatprep.subr.mxu1 %v564_v2 }
  0x17   : > { %519 = vmatpush3.msra.mxu0 %v249_v11  ;;  %538 = vmatpush3.msra.mxu1 %v240_v12 }
  0x18   : > { %520 = vmatprep.subr.mxu0 %v564_v2  ;;  %539 = vmatprep.subr.mxu1 %v564_v2 }
  0x19   : > { %521 = vmatpush3.msra.mxu0 %v248_v13  ;;  %540 = vmatpush3.msra.mxu1 %v239_v14 }
  0x1a   : > { %522 = vmatprep.subr.mxu0 %v564_v2  ;;  %541 = vmatprep.subr.mxu1 %v564_v2 }
  0x1b   : > { %523 = vmatpush3.msra.mxu0 %v247_v15  ;;  %524 = vmatprep.mubr.msk.f32.mxu0 %vm565_vm1, %v564_v2 }
  0x1c   : > { %542 = vmatpush3.msra.mxu1 %v238_v16  ;;  %543 = vmatprep.mubr.msk.f32.mxu1 %vm565_vm1, %v564_v2 }
  0x1d   : > { %525 = vmatmul.mubr.msk.f32.vlgmr.msra.gmra.mxu0 %vm255_vm0, %v246_v17  ;;  %544 = vmatmul.mubr.msk.f32.vlgmr.msra.gmra.mxu1 %vm255_vm0, %v237_v18 }
  0xdd   : > { %v325_v19 = vpop.f32.mrf.mxu0  ;;  %v398_v20 = vpop.f32.mrf.mxu1 }
  0xde   : > { %v399_v22 = vadd.f32 %v398_v20, %v325_v19 }
  0xdf   : > { %v526_v23 = vpop.f32.mrf.mxu0  ;;  %v545_v24 = vpop.f32.mrf.mxu1 }
  0xe0   : > { %v409_v25 = vadd.f32 %v487_v21, %v399_v22 }
  0xe2   : > { %411 = vst.msk [vmem:[%s236_s14] sm:$0xff] %vm410_vm2, %v409_v25 }
  0xe3 PF: > { %s15_s18 = sadd.s32 1, %s562_s18  }
  0xe4   : > { %p12_p4 = scmp.ge.s32.totalorder %s15_s18, 5  }
  0xe6   :  { %14 = sbr.rel (!%p12_p4) target bundleno = 1 (0x1), region = 73 }

</bundles_post_ra>
